<compile_context>
chip_gen: v5e
topology: v5e:2x2
jax: 0.10.0
libtpu: 0.0.40
codegen_flags: <defaults>
</compile_context>

<pallas_src>
import functools

import jax
import jax.numpy as jnp
from jax.experimental import pallas as pl
from jax.experimental.pallas import tpu as pltpu

LANE = 128
LAYER_DIMS = [12, 10, 8, 6, 4]  # hidden sizes between nfeat and nout


def _round_up(x, m):
    return (x + m - 1) // m * m


def gcn_kernel(adj_ref, pack_ref, out_ref, *, n_pad, num_layers):
    """Fused 6-layer GCN forward.

    pack_ref rows (all 128 lanes wide, zero-padded):
      [0, n_pad)                               : x
      [n_pad, n_pad + L*128)                   : W_l as [128, 128] slabs
      [n_pad + L*128, n_pad + L*128 + L*n_pad) : b_l pre-tiled to n_pad rows
    """
    adj = adj_ref[...]                                      # [n_pad, n_pad]
    h = pack_ref[pl.ds(0, n_pad), :]                        # [n_pad, 128] lane-dense slab
    w_base = n_pad
    b_base = n_pad + num_layers * LANE
    for l in range(num_layers):                             # statically unrolled
        w = pack_ref[pl.ds(w_base + l * LANE, LANE), :]     # [128, 128] static slice (free)
        b = pack_ref[pl.ds(b_base + l * n_pad, n_pad), :]   # [n_pad, 128] pre-tiled bias
        # support = h @ W  (zero padding in h-cols / W-rows keeps this exact)
        support = jnp.dot(h, w, preferred_element_type=jnp.float32)
        # h = adj @ support + b ; F.dropout(training=False) is identity -> skipped.
        h = jnp.dot(adj, support, preferred_element_type=jnp.float32) + b
    out_ref[...] = h                                        # lane-dense [n_pad, 128] store


def my_gcn_v3_forward(x, adj, weights, biases):
    """x: [N, nfeat], adj: [N, N]; weights[i]: [F_in, F_out], biases[i]: [1, F_out]."""
    n, nfeat = x.shape
    nout = weights[-1].shape[1]
    num_layers = len(weights)
    n_pad = _round_up(n, 8)
    f32 = jnp.float32

    # ---- host-side packing into a single lane-dense slab (1 DMA) -----------
    x_slab = jnp.zeros((n_pad, LANE), f32).at[:n, :nfeat].set(x.astype(f32))
    w_slabs = [
        jnp.zeros((LANE, LANE), f32).at[: w.shape[0], : w.shape[1]].set(w.astype(f32))
        for w in weights
    ]
    b_slabs = [
        jnp.broadcast_to(
            jnp.zeros((1, LANE), f32).at[:, : b.shape[1]].set(b.astype(f32)),
            (n_pad, LANE),
        )
        for b in biases
    ]
    pack = jnp.concatenate([x_slab] + w_slabs + b_slabs, axis=0)
    adj_pad = jnp.zeros((n_pad, n_pad), f32).at[:n, :n].set(adj.astype(f32))

    # ---- advisory cost estimate for XLA's scheduler -------------------------
    flops = 0
    for w in weights:
        fi, fo = w.shape
        flops += 2 * n * fi * fo + 2 * n * n * fo + n * fo
    bytes_accessed = 4 * (pack.size + adj_pad.size + n_pad * LANE)
    cost = pl.CostEstimate(flops=flops, transcendentals=0, bytes_accessed=bytes_accessed)

    vmem = pl.BlockSpec(memory_space=pltpu.MemorySpace.VMEM)
    out_pad = pl.pallas_call(
        functools.partial(gcn_kernel, n_pad=n_pad, num_layers=num_layers),
        out_shape=jax.ShapeDtypeStruct((n_pad, LANE), f32),
        in_specs=[vmem, vmem],
        out_specs=vmem,
        cost_estimate=cost,
    )(adj_pad, pack)
    # Crop the lane-dense padded output back to the logical shape.
    return out_pad[:n, :nout]


def init_params(key, nfeat, nout):
    """Deterministic init (matches pygcn's uniform(-1/sqrt(fo), 1/sqrt(fo)) scheme)."""
    dims = [nfeat] + LAYER_DIMS + [nout]
    weights, biases = [], []
    for fi, fo in zip(dims[:-1], dims[1:]):
        key, kw, kb = jax.random.split(key, 3)
        bound = 1.0 / jnp.sqrt(jnp.float32(fo))
        weights.append(jax.random.uniform(kw, (fi, fo), jnp.float32, -bound, bound))
        biases.append(jax.random.uniform(kb, (1, fo), jnp.float32, -bound, bound))
    return weights, biases


def reference_forward(x, adj, weights, biases):
    h = x
    for w, b in zip(weights, biases):
        h = adj @ (h @ w) + b
    return h


if __name__ == "__main__":
    N, NFEAT, NOUT = 16, 32, 4

    key = jax.random.PRNGKey(0)
    kx, kadj, kparams = jax.random.split(key, 3)

    x = jax.random.normal(kx, (N, NFEAT), jnp.float32)

    # Symmetric normalized adjacency with self loops (typical GCN preprocessing).
    a = (jax.random.uniform(kadj, (N, N)) > 0.7).astype(jnp.float32)
    a = jnp.maximum(a, a.T) + jnp.eye(N, dtype=jnp.float32)
    d_inv_sqrt = 1.0 / jnp.sqrt(a.sum(axis=1))
    adj = a * d_inv_sqrt[:, None] * d_inv_sqrt[None, :]

    weights, biases = init_params(kparams, NFEAT, NOUT)

    out = my_gcn_v3_forward(x, adj, weights, biases)
    out = jax.block_until_ready(out)

    ref = reference_forward(x, adj, weights, biases)
    assert out.shape == (N, NOUT)
    assert jnp.allclose(out, ref, atol=1e-4, rtol=1e-4)

    print("KERNEL_OK")
</pallas_src>

<mosaic_0001>
module attributes {stable_mosaic.version = 11 : i64} {
  func.func @gcn_kernel(%arg0: memref<16x16xf32, #tpu.memory_space<vmem>>, %arg1: memref<880x128xf32, #tpu.memory_space<vmem>>, %arg2: memref<16x128xf32, #tpu.memory_space<vmem>>) attributes {dimension_semantics = [], scalar_prefetch = 0 : i64, scratch_operands = 0 : i64, tpu.core_type = #tpu.core_type<tc>} {
    %c0 = arith.constant 0 : index
    %c0_0 = arith.constant 0 : index
    %0 = vector.load %arg0[%c0, %c0_0] : memref<16x16xf32, #tpu.memory_space<vmem>>, vector<16x16xf32>
    %c0_1 = arith.constant 0 : index
    %c0_2 = arith.constant 0 : index
    %1 = vector.load %arg1[%c0_1, %c0_2] : memref<880x128xf32, #tpu.memory_space<vmem>>, vector<16x128xf32>
    %c16 = arith.constant 16 : index
    %c0_3 = arith.constant 0 : index
    %2 = vector.load %arg1[%c16, %c0_3] : memref<880x128xf32, #tpu.memory_space<vmem>>, vector<128x128xf32>
    %c784 = arith.constant 784 : index
    %c0_4 = arith.constant 0 : index
    %3 = vector.load %arg1[%c784, %c0_4] : memref<880x128xf32, #tpu.memory_space<vmem>>, vector<16x128xf32>
    %cst = arith.constant dense<0.000000e+00> : vector<16x128xf32>
    %4 = tpu.matmul %1, %2, %cst {dimension_numbers = #tpu.dot_dimension_numbers<[1], [0], [0], [1], [0, 0, 1, 1], [], []>} : vector<16x128xf32>, vector<128x128xf32>, vector<16x128xf32> -> vector<16x128xf32>
    %cst_5 = arith.constant dense<0.000000e+00> : vector<16x128xf32>
    %5 = tpu.matmul %0, %4, %cst_5 {dimension_numbers = #tpu.dot_dimension_numbers<[1], [0], [0], [1], [0, 0, 1, 1], [], []>} : vector<16x16xf32>, vector<16x128xf32>, vector<16x128xf32> -> vector<16x128xf32>
    %6 = arith.addf %5, %3 : vector<16x128xf32>
    %c144 = arith.constant 144 : index
    %c0_6 = arith.constant 0 : index
    %7 = vector.load %arg1[%c144, %c0_6] : memref<880x128xf32, #tpu.memory_space<vmem>>, vector<128x128xf32>
    %c800 = arith.constant 800 : index
    %c0_7 = arith.constant 0 : index
    %8 = vector.load %arg1[%c800, %c0_7] : memref<880x128xf32, #tpu.memory_space<vmem>>, vector<16x128xf32>
    %cst_8 = arith.constant dense<0.000000e+00> : vector<16x128xf32>
    %9 = tpu.matmul %6, %7, %cst_8 {dimension_numbers = #tpu.dot_dimension_numbers<[1], [0], [0], [1], [0, 0, 1, 1], [], []>} : vector<16x128xf32>, vector<128x128xf32>, vector<16x128xf32> -> vector<16x128xf32>
    %cst_9 = arith.constant dense<0.000000e+00> : vector<16x128xf32>
    %10 = tpu.matmul %0, %9, %cst_9 {dimension_numbers = #tpu.dot_dimension_numbers<[1], [0], [0], [1], [0, 0, 1, 1], [], []>} : vector<16x16xf32>, vector<16x128xf32>, vector<16x128xf32> -> vector<16x128xf32>
    %11 = arith.addf %10, %8 : vector<16x128xf32>
    %c272 = arith.constant 272 : index
    %c0_10 = arith.constant 0 : index
    %12 = vector.load %arg1[%c272, %c0_10] : memref<880x128xf32, #tpu.memory_space<vmem>>, vector<128x128xf32>
    %c816 = arith.constant 816 : index
    %c0_11 = arith.constant 0 : index
    %13 = vector.load %arg1[%c816, %c0_11] : memref<880x128xf32, #tpu.memory_space<vmem>>, vector<16x128xf32>
    %cst_12 = arith.constant dense<0.000000e+00> : vector<16x128xf32>
    %14 = tpu.matmul %11, %12, %cst_12 {dimension_numbers = #tpu.dot_dimension_numbers<[1], [0], [0], [1], [0, 0, 1, 1], [], []>} : vector<16x128xf32>, vector<128x128xf32>, vector<16x128xf32> -> vector<16x128xf32>
    %cst_13 = arith.constant dense<0.000000e+00> : vector<16x128xf32>
    %15 = tpu.matmul %0, %14, %cst_13 {dimension_numbers = #tpu.dot_dimension_numbers<[1], [0], [0], [1], [0, 0, 1, 1], [], []>} : vector<16x16xf32>, vector<16x128xf32>, vector<16x128xf32> -> vector<16x128xf32>
    %16 = arith.addf %15, %13 : vector<16x128xf32>
    %c400 = arith.constant 400 : index
    %c0_14 = arith.constant 0 : index
    %17 = vector.load %arg1[%c400, %c0_14] : memref<880x128xf32, #tpu.memory_space<vmem>>, vector<128x128xf32>
    %c832 = arith.constant 832 : index
    %c0_15 = arith.constant 0 : index
    %18 = vector.load %arg1[%c832, %c0_15] : memref<880x128xf32, #tpu.memory_space<vmem>>, vector<16x128xf32>
    %cst_16 = arith.constant dense<0.000000e+00> : vector<16x128xf32>
    %19 = tpu.matmul %16, %17, %cst_16 {dimension_numbers = #tpu.dot_dimension_numbers<[1], [0], [0], [1], [0, 0, 1, 1], [], []>} : vector<16x128xf32>, vector<128x128xf32>, vector<16x128xf32> -> vector<16x128xf32>
    %cst_17 = arith.constant dense<0.000000e+00> : vector<16x128xf32>
    %20 = tpu.matmul %0, %19, %cst_17 {dimension_numbers = #tpu.dot_dimension_numbers<[1], [0], [0], [1], [0, 0, 1, 1], [], []>} : vector<16x16xf32>, vector<16x128xf32>, vector<16x128xf32> -> vector<16x128xf32>
    %21 = arith.addf %20, %18 : vector<16x128xf32>
    %c528 = arith.constant 528 : index
    %c0_18 = arith.constant 0 : index
    %22 = vector.load %arg1[%c528, %c0_18] : memref<880x128xf32, #tpu.memory_space<vmem>>, vector<128x128xf32>
    %c848 = arith.constant 848 : index
    %c0_19 = arith.constant 0 : index
    %23 = vector.load %arg1[%c848, %c0_19] : memref<880x128xf32, #tpu.memory_space<vmem>>, vector<16x128xf32>
    %cst_20 = arith.constant dense<0.000000e+00> : vector<16x128xf32>
    %24 = tpu.matmul %21, %22, %cst_20 {dimension_numbers = #tpu.dot_dimension_numbers<[1], [0], [0], [1], [0, 0, 1, 1], [], []>} : vector<16x128xf32>, vector<128x128xf32>, vector<16x128xf32> -> vector<16x128xf32>
    %cst_21 = arith.constant dense<0.000000e+00> : vector<16x128xf32>
    %25 = tpu.matmul %0, %24, %cst_21 {dimension_numbers = #tpu.dot_dimension_numbers<[1], [0], [0], [1], [0, 0, 1, 1], [], []>} : vector<16x16xf32>, vector<16x128xf32>, vector<16x128xf32> -> vector<16x128xf32>
    %26 = arith.addf %25, %23 : vector<16x128xf32>
    %c656 = arith.constant 656 : index
    %c0_22 = arith.constant 0 : index
    %27 = vector.load %arg1[%c656, %c0_22] : memref<880x128xf32, #tpu.memory_space<vmem>>, vector<128x128xf32>
    %c864 = arith.constant 864 : index
    %c0_23 = arith.constant 0 : index
    %28 = vector.load %arg1[%c864, %c0_23] : memref<880x128xf32, #tpu.memory_space<vmem>>, vector<16x128xf32>
    %cst_24 = arith.constant dense<0.000000e+00> : vector<16x128xf32>
    %29 = tpu.matmul %26, %27, %cst_24 {dimension_numbers = #tpu.dot_dimension_numbers<[1], [0], [0], [1], [0, 0, 1, 1], [], []>} : vector<16x128xf32>, vector<128x128xf32>, vector<16x128xf32> -> vector<16x128xf32>
    %cst_25 = arith.constant dense<0.000000e+00> : vector<16x128xf32>
    %30 = tpu.matmul %0, %29, %cst_25 {dimension_numbers = #tpu.dot_dimension_numbers<[1], [0], [0], [1], [0, 0, 1, 1], [], []>} : vector<16x16xf32>, vector<16x128xf32>, vector<16x128xf32> -> vector<16x128xf32>
    %31 = arith.addf %30, %28 : vector<16x128xf32>
    %c0_26 = arith.constant 0 : index
    %c0_27 = arith.constant 0 : index
    %32 = vector.load %arg2[%c0_26, %c0_27] : memref<16x128xf32, #tpu.memory_space<vmem>>, vector<16x128xf32>
    tpu.vector_store %arg2[%c0_26, %c0_27], %31 {strides = array<i32>} : memref<16x128xf32, #tpu.memory_space<vmem>>, vector<16x128xf32>,
    return
  }
}

</mosaic_0001>

<bundles_post_ra>
// kernel: tpu_custom_call.1
= control target key start
LH: loop header
LB: loop body
LE: loop exit
PB: predicated region body
PF: predicated region fallthrough
CT: control target
= control target key end

     0   :  { %7 = vsyncpa [#allocation3], 0  ;;  %s622_s0 = inlined_call_operand.hbm [shape: f32[16,16], index: 0, kind: input, shape index: {}]   ;;  %s623_s1 = inlined_call_operand.hbm [shape: f32[880,128], index: 1, kind: input, shape index: {}]   ;;  %s624_s2 = inlined_call_operand.hbm [shape: f32[16,128], index: 2, kind: output, shape index: {}]  }
   0x1   :  { %8 = vsyncpa [#allocation6], 0 }
   0x2   :  { %9 = vsyncpa [#allocation4], 0  ;;  %s14_s11 = sshll.u32 %s622_s0, 4  ;;  %s556_s12 = smov [#allocation2]   ;;  %s15_s11 = int_to_ptr.hbm [resolvable:$true] %s14_s11 }
   0x3   :  { %s16_s13 = sshll.u32 %s556_s12, 4  ;;  %s27_s16 = sshll.u32 %s623_s1, 4  ;;  %s17_s13 = int_to_ptr.vmem [resolvable:$true] %s16_s13  ;;  %s28_s16 = int_to_ptr.hbm [resolvable:$true] %s27_s16 }
   0x4   :  { %s557_s17 = smov 128   ;;  %s558_s18 = smov 8  }
   0x5   :  { %22 = dma.hbm_to_vmem [thread:$0]  %s15_s11, 256, %s17_s13, [#allocation3], %s557_s17, %s557_s17, %s558_s18  }
   0x6   :  { %s559_s19 = smov [#allocation5]  }
   0x7   :  { %s29_s20 = sshll.u32 %s559_s19, 4  ;;  %s30_s20 = int_to_ptr.vmem [resolvable:$true] %s29_s20 }
   0x8   :  { %35 = dma.hbm_to_vmem [thread:$0]  %s28_s16, 14080, %s30_s20, [#allocation6], %s557_s17, %s557_s17, %s558_s18  }
   0x9   :  { %550 = dma.done.wait [#allocation3], 256  }
   0xa   :  { %551 = vsyncadd [#allocation3], 4294967040 }
   0xb   :  { %552 = dma.done.wait [#allocation6], 14080  }
   0xc   :  { %553 = vsyncadd [#allocation6], 4294953216  ;;  %v63_v0 = vld [vmem:[#allocation5 + $0x88] sm:$0xff]  ;;  %v62_v1 = vld [vmem:[#allocation5 + $0x80] sm:$0xff]  ;;  %vm89_vm0 = vcmask 130048   ;;  %s560_s0 = smov [#allocation7]  }
   0xd   :  { %66 = vmatpush.msra.mxu0 %v63_v0  ;;  %v61_v2 = vld [vmem:[#allocation5 + $0x78] sm:$0xff]  ;;  %v60_v3 = vld [vmem:[#allocation5 + $0x70] sm:$0xff]  ;;  %v59_v4 = vld [vmem:[#allocation5 + $0x68] sm:$0xff]  ;;  %s445_s1 = sshll.u32 %s560_s0, 4  ;;  %s447_s23 = sshll.u32 %s624_s2, 4  ;;  %s446_s1 = int_to_ptr.vmem [resolvable:$true] %s445_s1  ;;  %s448_s23 = int_to_ptr.hbm [resolvable:$true] %s447_s23 }
   0xe   :  { %v58_v5 = vld [vmem:[#allocation5 + $0x60] sm:$0xff]  ;;  %v57_v6 = vld [vmem:[#allocation5 + $0x58] sm:$0xff]  ;;  %v56_v7 = vld [vmem:[#allocation5 + $0x50] sm:$0xff] }
   0xf   :  { %67 = vmatpush.msra.mxu0 %v62_v1  ;;  %v55_v8 = vld [vmem:[#allocation5 + $0x48] sm:$0xff]  ;;  %v54_v9 = vld [vmem:[#allocation5 + $0x40] sm:$0xff]  ;;  %v53_v10 = vld [vmem:[#allocation5 + $0x38] sm:$0xff] }
  0x10   :  { %v52_v11 = vld [vmem:[#allocation5 + $0x30] sm:$0xff]  ;;  %v51_v12 = vld [vmem:[#allocation5 + $0x28] sm:$0xff]  ;;  %v50_v13 = vld [vmem:[#allocation5 + $0x20] sm:$0xff] }
  0x11   :  { %68 = vmatpush.msra.mxu0 %v61_v2  ;;  %v49_v14 = vld [vmem:[#allocation5 + $0x18] sm:$0xff]  ;;  %v48_v15 = vld [vmem:[#allocation5 + $0x10] sm:$0xff]  ;;  %v46_v16 = vld [vmem:[#allocation5] sm:$0xff] }
  0x12   :  { %v47_v17 = vld [vmem:[#allocation5 + $0x8] sm:$0xff]  ;;  %v133_v19 = vld [vmem:[#allocation5 + $0x100] sm:$0xff]  ;;  %v132_v20 = vld [vmem:[#allocation5 + $0xf8] sm:$0xff] }
  0x13   :  { %69 = vmatpush.msra.mxu0 %v60_v3  ;;  %v134_v18 = vld [vmem:[#allocation5 + $0x108] sm:$0xff]  ;;  %v131_v21 = vld [vmem:[#allocation5 + $0xf0] sm:$0xff]  ;;  %v129_v23 = vld [vmem:[#allocation5 + $0xe0] sm:$0xff] }
  0x14   :  { %137 = vmatpush.msra.mxu2 %v134_v18  ;;  %v130_v22 = vld [vmem:[#allocation5 + $0xe8] sm:$0xff]  ;;  %v128_v24 = vld [vmem:[#allocation5 + $0xd8] sm:$0xff]  ;;  %v127_v26 = vld [vmem:[#allocation5 + $0xd0] sm:$0xff] }
  0x15   :  { %70 = vmatpush.msra.mxu0 %v59_v4  ;;  %v126_v27 = vld [vmem:[#allocation5 + $0xc8] sm:$0xff]  ;;  %v125_v28 = vld [vmem:[#allocation5 + $0xc0] sm:$0xff]  ;;  %v124_v29 = vld [vmem:[#allocation5 + $0xb8] sm:$0xff] }
  0x16   :  { %138 = vmatpush.msra.mxu2 %v133_v19  ;;  %v123_v31 = vld [vmem:[#allocation5 + $0xb0] sm:$0xff]  ;;  %v122_v33 = vld [vmem:[#allocation5 + $0xa8] sm:$0xff]  ;;  %v121_v34 = vld [vmem:[#allocation5 + $0xa0] sm:$0xff] }
  0x17   :  { %71 = vmatpush.msra.mxu0 %v58_v5  ;;  %v588_v32 = vld [vmem:[#allocation2] sm:$0xff]  ;;  %v592_v35 = vld [vmem:[#allocation2 + $0x8] sm:$0xff]  ;;  %v198_v44 = vld [vmem:[#allocation5 + $0x188] sm:$0xff] }
  0x18   :  { %139 = vmatpush.msra.mxu2 %v132_v20  ;;  %v120_v36 = vld [vmem:[#allocation5 + $0x98] sm:$0xff]  ;;  %v119_v37 = vld [vmem:[#allocation5 + $0x90] sm:$0xff]  ;;  %v197_v45 = vld [vmem:[#allocation5 + $0x180] sm:$0xff] }
  0x19   :  { %72 = vmatpush.msra.mxu0 %v57_v6  ;;  %v64_v38 = vld [vmem:[#allocation5 + $0x310] sm:$0xff]  ;;  %v65_v41 = vld [vmem:[#allocation5 + $0x318] sm:$0xff]  ;;  %v194_v48 = vld [vmem:[#allocation5 + $0x168] sm:$0xff] }
  0x1a   :  { %140 = vmatpush.msra.mxu2 %v131_v21  ;;  %v196_v46 = vld [vmem:[#allocation5 + $0x178] sm:$0xff]  ;;  %v195_v47 = vld [vmem:[#allocation5 + $0x170] sm:$0xff]  ;;  %v193_v49 = vld [vmem:[#allocation5 + $0x160] sm:$0xff] }
  0x1b   :  { %73 = vmatpush.msra.mxu0 %v56_v7  ;;  %v192_v50 = vld [vmem:[#allocation5 + $0x158] sm:$0xff]  ;;  %v191_v52 = vld [vmem:[#allocation5 + $0x150] sm:$0xff]  ;;  %v190_v53 = vld [vmem:[#allocation5 + $0x148] sm:$0xff] }
  0x1c   :  { %141 = vmatpush.msra.mxu2 %v130_v22  ;;  %v189_v54 = vld [vmem:[#allocation5 + $0x140] sm:$0xff]  ;;  %v188_v55 = vld [vmem:[#allocation5 + $0x138] sm:$0xff]  ;;  %v187_v57 = vld [vmem:[#allocation5 + $0x130] sm:$0xff] }
  0x1d   :  { %74 = vmatpush.msra.mxu0 %v55_v8  ;;  %v186_v58 = vld [vmem:[#allocation5 + $0x128] sm:$0xff]  ;;  %v185_v59 = vld [vmem:[#allocation5 + $0x120] sm:$0xff]  ;;  %v184_v60 = vld [vmem:[#allocation5 + $0x118] sm:$0xff] }
  0x1e   :  { %142 = vmatpush.msra.mxu2 %v129_v23  ;;  %v183_v61 = vld [vmem:[#allocation5 + $0x110] sm:$0xff]  ;;  %v135_v62 = vld [vmem:[#allocation5 + $0x320] sm:$0xff]  ;;  %v136_v1 = vld [vmem:[#allocation5 + $0x328] sm:$0xff] }
  0x1f   :  { %75 = vmatpush.msra.mxu0 %v54_v9  ;;  %v262_v6 = vld [vmem:[#allocation5 + $0x208] sm:$0xff]  ;;  %v261_v7 = vld [vmem:[#allocation5 + $0x200] sm:$0xff]  ;;  %v260_v8 = vld [vmem:[#allocation5 + $0x1f8] sm:$0xff] }
  0x20   :  { %143 = vmatpush.msra.mxu2 %v128_v24  ;;  %v259_v9 = vld [vmem:[#allocation5 + $0x1f0] sm:$0xff]  ;;  %v250_v18 = vld [vmem:[#allocation5 + $0x1a8] sm:$0xff]  ;;  %v249_v19 = vld [vmem:[#allocation5 + $0x1a0] sm:$0xff] }
  0x21   :  { %76 = vmatpush.msra.mxu0 %v53_v10  ;;  %v258_v10 = vld [vmem:[#allocation5 + $0x1e8] sm:$0xff]  ;;  %v248_v20 = vld [vmem:[#allocation5 + $0x198] sm:$0xff]  ;;  %v247_v21 = vld [vmem:[#allocation5 + $0x190] sm:$0xff] }
  0x22   :  { %144 = vmatpush.msra.mxu2 %v127_v26  ;;  %v199_v22 = vld [vmem:[#allocation5 + $0x330] sm:$0xff] }
  0x23   :  { %77 = vmatpush.msra.mxu0 %v52_v11  ;;  %v257_v11 = vld [vmem:[#allocation5 + $0x1e0] sm:$0xff] }
  0x24   :  { %145 = vmatpush.msra.mxu2 %v126_v27 }
  0x25   :  { %78 = vmatpush.msra.mxu0 %v51_v12  ;;  %v256_v12 = vld [vmem:[#allocation5 + $0x1d8] sm:$0xff] }
  0x26   :  { %146 = vmatpush.msra.mxu2 %v125_v28  ;;  %v326_v28 = vld [vmem:[#allocation5 + $0x288] sm:$0xff] }
  0x27   :  { %79 = vmatpush.msra.mxu0 %v50_v13  ;;  %v255_v13 = vld [vmem:[#allocation5 + $0x1d0] sm:$0xff] }
  0x28   :  { %147 = vmatpush.msra.mxu2 %v124_v29  ;;  %v325_v29 = vld [vmem:[#allocation5 + $0x280] sm:$0xff] }
  0x29   :  { %80 = vmatpush.msra.mxu0 %v49_v14  ;;  %v254_v14 = vld [vmem:[#allocation5 + $0x1c8] sm:$0xff] }
  0x2a   :  { %148 = vmatpush.msra.mxu2 %v123_v31  ;;  %v323_v31 = vld [vmem:[#allocation5 + $0x270] sm:$0xff] }
  0x2b   :  { %81 = vmatpush.msra.mxu0 %v48_v15  ;;  %v253_v15 = vld [vmem:[#allocation5 + $0x1c0] sm:$0xff] }
  0x2c   :  { %82 = vmatmul.f32.vlgmr.msra.gmra.mxu0 %v46_v16  ;;  %149 = vmatpush.msra.mxu2 %v122_v33  ;;  %v252_v16 = vld [vmem:[#allocation5 + $0x1b8] sm:$0xff]  ;;  %v322_v33 = vld [vmem:[#allocation5 + $0x268] sm:$0xff] }
  0x2e   :  { %150 = vmatpush.msra.mxu2 %v121_v34  ;;  %v321_v34 = vld [vmem:[#allocation5 + $0x260] sm:$0xff] }
  0x30   :  { %151 = vmatpush.msra.mxu2 %v120_v36  ;;  %v320_v36 = vld [vmem:[#allocation5 + $0x258] sm:$0xff] }
  0x32   :  { %152 = vmatpush.msra.mxu2 %v119_v37 }
  0x34   :  { %85 = vmatmul.f32.gmra.mxu0 %v47_v17  ;;  %v251_v17 = vld [vmem:[#allocation5 + $0x1b0] sm:$0xff]  ;;  %329 = vmatpush.msrb.mxu2 %v326_v28 }
  0x36   :  { %330 = vmatpush.msrb.mxu2 %v325_v29 }
  0xa9   :  { %v83_v25 = vpop.f32.mrf.mxu0 }
  0xb1   :  { %v86_v30 = vpop.f32.mrf.mxu0 }
  0xb2   :  { %110 = vmatpush.msra.mxu1 %v86_v30  ;;  %v324_v30 = vld [vmem:[#allocation5 + $0x278] sm:$0xff] }
  0xb3   :  { %331 = vmatpush.msrb.mxu2 %v324_v30 }
  0xb4   :  { %111 = vmatpush.msra.mxu1 %v83_v25  ;;  %v200_v25 = vld [vmem:[#allocation5 + $0x338] sm:$0xff] }
  0xb5   :  { %461 = vmatmul.msk.f32.vlgmr.msra.gmra.mxu1 %vm89_vm0, %v588_v32  ;;  %332 = vmatpush.msrb.mxu2 %v323_v31 }
  0xb6   :  { %201 = vmatpush.msrb.mxu1 %v198_v44  ;;  %v314_v44 = vld [vmem:[#allocation5 + $0x228] sm:$0xff] }
  0xb7   :  { %333 = vmatpush.msrb.mxu2 %v322_v33 }
  0xb8   :  { %202 = vmatpush.msrb.mxu1 %v197_v45  ;;  %v313_v45 = vld [vmem:[#allocation5 + $0x220] sm:$0xff] }
  0xb9   :  { %334 = vmatpush.msrb.mxu2 %v321_v34 }
  0xba   :  { %203 = vmatpush.msrb.mxu1 %v196_v46  ;;  %v312_v46 = vld [vmem:[#allocation5 + $0x218] sm:$0xff] }
  0xbb   :  { %335 = vmatpush.msrb.mxu2 %v320_v36 }
  0xbc   :  { %204 = vmatpush.msrb.mxu1 %v195_v47  ;;  %v311_v47 = vld [vmem:[#allocation5 + $0x210] sm:$0xff] }
  0xbd   :  { %462 = vmatmul.msk.f32.gmra.mxu1 %vm89_vm0, %v592_v35 }
  0xbe   :  { %205 = vmatpush.msrb.mxu1 %v194_v48  ;;  %v263_v48 = vld [vmem:[#allocation5 + $0x340] sm:$0xff] }
  0xc0   :  { %206 = vmatpush.msrb.mxu1 %v193_v49 }
  0xc2   :  { %207 = vmatpush.msrb.mxu1 %v192_v50 }
  0xc4   :  { %208 = vmatpush.msrb.mxu1 %v191_v52 }
  0xc6   :  { %209 = vmatpush.msrb.mxu1 %v190_v53 }
  0xc8   :  { %210 = vmatpush.msrb.mxu1 %v189_v54  ;;  %v390_v54 = vld [vmem:[#allocation5 + $0x308] sm:$0xff] }
  0xc9   :  { %393 = vmatpush.msrb.mxu0 %v390_v54 }
  0xca   :  { %211 = vmatpush.msrb.mxu1 %v188_v55  ;;  %v389_v55 = vld [vmem:[#allocation5 + $0x300] sm:$0xff] }
  0xcb   :  { %394 = vmatpush.msrb.mxu0 %v389_v55 }
  0xcc   :  { %212 = vmatpush.msrb.mxu1 %v187_v57  ;;  %v387_v57 = vld [vmem:[#allocation5 + $0x2f0] sm:$0xff] }
  0xce   :  { %213 = vmatpush.msrb.mxu1 %v186_v58  ;;  %v386_v58 = vld [vmem:[#allocation5 + $0x2e8] sm:$0xff] }
  0xd0   :  { %214 = vmatpush.msrb.mxu1 %v185_v59  ;;  %v385_v59 = vld [vmem:[#allocation5 + $0x2e0] sm:$0xff] }
  0xd2   :  { %215 = vmatpush.msrb.mxu1 %v184_v60  ;;  %v384_v60 = vld [vmem:[#allocation5 + $0x2d8] sm:$0xff] }
  0xd4   :  { %216 = vmatpush.msrb.mxu1 %v183_v61 }
 0x132   :  { %v113_v39 = vpop.f32.mrf.mxu1 }
 0x133   :  { %v114_v40 = vadd.f32 %v113_v39, %v64_v38  ;;  %v319_v38 = vld [vmem:[#allocation5 + $0x250] sm:$0xff]  ;;  %v318_v39 = vld [vmem:[#allocation5 + $0x248] sm:$0xff] }
 0x134   :  { %336 = vmatpush.msrb.mxu2 %v319_v38 }
 0x135   :  { %153 = vmatmul.f32.vlgmr.msra.gmra.mxu2 %v114_v40  ;;  %v317_v40 = vld [vmem:[#allocation5 + $0x240] sm:$0xff] }
 0x136   :  { %337 = vmatpush.msrb.mxu2 %v318_v39 }
 0x138   :  { %338 = vmatpush.msrb.mxu2 %v317_v40 }
 0x13a   :  { %v116_v42 = vpop.f32.mrf.mxu1 }
 0x13b   :  { %v117_v43 = vadd.f32 %v116_v42, %v65_v41  ;;  %v316_v41 = vld [vmem:[#allocation5 + $0x238] sm:$0xff] }
 0x13c   :  { %339 = vmatpush.msrb.mxu2 %v316_v41 }
 0x13d   :  { %156 = vmatmul.f32.gmra.mxu2 %v117_v43  ;;  %v315_v43 = vld [vmem:[#allocation5 + $0x230] sm:$0xff] }
 0x13e   :  { %340 = vmatpush.msrb.mxu2 %v315_v43 }
 0x140   :  { %341 = vmatpush.msrb.mxu2 %v314_v44 }
 0x142   :  { %342 = vmatpush.msrb.mxu2 %v313_v45 }
 0x144   :  { %343 = vmatpush.msrb.mxu2 %v312_v46 }
 0x146   :  { %344 = vmatpush.msrb.mxu2 %v311_v47 }
 0x1b8   :  { %v154_v51 = vpop.f32.mrf.mxu2 }
 0x1c0   :  { %v157_v56 = vpop.f32.mrf.mxu2 }
 0x1c1   :  { %174 = vmatpush.msra.mxu3 %v157_v56  ;;  %v388_v56 = vld [vmem:[#allocation5 + $0x2f8] sm:$0xff] }
 0x1c2   :  { %395 = vmatpush.msrb.mxu0 %v388_v56 }
 0x1c3   :  { %175 = vmatpush.msra.mxu3 %v154_v51  ;;  %v264_v51 = vld [vmem:[#allocation5 + $0x348] sm:$0xff] }
 0x1c4   :  { %463 = vmatmul.msk.f32.vlgmr.msra.gmra.mxu3 %vm89_vm0, %v588_v32  ;;  %396 = vmatpush.msrb.mxu0 %v387_v57 }
 0x1c6   :  { %397 = vmatpush.msrb.mxu0 %v386_v58 }
 0x1c8   :  { %398 = vmatpush.msrb.mxu0 %v385_v59 }
 0x1ca   :  { %399 = vmatpush.msrb.mxu0 %v384_v60 }
 0x1cc   :  { %464 = vmatmul.msk.f32.gmra.mxu3 %vm89_vm0, %v592_v35 }
 0x247   :  { %v177_v63 = vpop.f32.mrf.mxu3 }
 0x248   :  { %v178_v0 = vadd.f32 %v177_v63, %v135_v62  ;;  %v383_v62 = vld [vmem:[#allocation5 + $0x2d0] sm:$0xff]  ;;  %v382_v63 = vld [vmem:[#allocation5 + $0x2c8] sm:$0xff] }
 0x249   :  { %400 = vmatpush.msrb.mxu0 %v383_v62 }
 0x24a   :  { %217 = vmatmul.f32.vlgmr.msrb.gmra.mxu1 %v178_v0  ;;  %v381_v0 = vld [vmem:[#allocation5 + $0x2c0] sm:$0xff] }
 0x24b   :  { %401 = vmatpush.msrb.mxu0 %v382_v63 }
 0x24d   :  { %402 = vmatpush.msrb.mxu0 %v381_v0 }
 0x24f   :  { %v180_v2 = vpop.f32.mrf.mxu3 }
 0x250   :  { %v181_v3 = vadd.f32 %v180_v2, %v136_v1  ;;  %v380_v1 = vld [vmem:[#allocation5 + $0x2b8] sm:$0xff] }
 0x251   :  { %403 = vmatpush.msrb.mxu0 %v380_v1 }
 0x252   :  { %220 = vmatmul.f32.gmra.mxu1 %v181_v3  ;;  %v379_v3 = vld [vmem:[#allocation5 + $0x2b0] sm:$0xff] }
 0x253   :  { %404 = vmatpush.msrb.mxu0 %v379_v3 }
 0x2c7   :  { %v218_v4 = vpop.f32.mrf.mxu1 }
 0x2cf   :  { %v221_v5 = vpop.f32.mrf.mxu1 }
 0x2d0   :  { %238 = vmatpush.msrb.mxu3 %v221_v5  ;;  %v377_v5 = vld [vmem:[#allocation5 + $0x2a0] sm:$0xff] }
 0x2d2   :  { %239 = vmatpush.msrb.mxu3 %v218_v4  ;;  %v378_v4 = vld [vmem:[#allocation5 + $0x2a8] sm:$0xff] }
 0x2d3   :  { %465 = vmatmul.msk.f32.vlgmr.msrb.gmra.mxu3 %vm89_vm0, %v588_v32  ;;  %405 = vmatpush.msrb.mxu0 %v378_v4 }
 0x2d4   :  { %265 = vmatpush.msra.mxu3 %v262_v6  ;;  %v376_v6 = vld [vmem:[#allocation5 + $0x298] sm:$0xff] }
 0x2d5   :  { %406 = vmatpush.msrb.mxu0 %v377_v5 }
 0x2d6   :  { %266 = vmatpush.msra.mxu3 %v261_v7  ;;  %v375_v7 = vld [vmem:[#allocation5 + $0x290] sm:$0xff] }
 0x2d7   :  { %407 = vmatpush.msrb.mxu0 %v376_v6 }
 0x2d8   :  { %267 = vmatpush.msra.mxu3 %v260_v8  ;;  %v327_v8 = vld [vmem:[#allocation5 + $0x350] sm:$0xff] }
 0x2d9   :  { %408 = vmatpush.msrb.mxu0 %v375_v7 }
 0x2da   :  { %268 = vmatpush.msra.mxu3 %v259_v9 }
 0x2db   :  { %466 = vmatmul.msk.f32.gmra.mxu3 %vm89_vm0, %v592_v35 }
 0x2dc   :  { %269 = vmatpush.msra.mxu3 %v258_v10 }
 0x2de   :  { %270 = vmatpush.msra.mxu3 %v257_v11  ;;  %v328_v11 = vld [vmem:[#allocation5 + $0x358] sm:$0xff] }
 0x2e0   :  { %271 = vmatpush.msra.mxu3 %v256_v12 }
 0x2e2   :  { %272 = vmatpush.msra.mxu3 %v255_v13 }
 0x2e4   :  { %273 = vmatpush.msra.mxu3 %v254_v14 }
 0x2e6   :  { %274 = vmatpush.msra.mxu3 %v253_v15 }
 0x2e8   :  { %275 = vmatpush.msra.mxu3 %v252_v16  ;;  %v391_v16 = vld [vmem:[#allocation5 + $0x360] sm:$0xff] }
 0x2ea   :  { %276 = vmatpush.msra.mxu3 %v251_v17 }
 0x2ec   :  { %277 = vmatpush.msra.mxu3 %v250_v18 }
 0x2ee   :  { %278 = vmatpush.msra.mxu3 %v249_v19  ;;  %v392_v19 = vld [vmem:[#allocation5 + $0x368] sm:$0xff] }
 0x2f0   :  { %279 = vmatpush.msra.mxu3 %v248_v20 }
 0x2f2   :  { %280 = vmatpush.msra.mxu3 %v247_v21 }
 0x356   :  { %v241_v23 = vpop.f32.mrf.mxu3 }
 0x357   :  { %v242_v24 = vadd.f32 %v241_v23, %v199_v22 }
 0x359   :  { %281 = vmatmul.f32.vlgmr.msra.gmra.mxu3 %v242_v24 }
 0x35e   :  { %v244_v26 = vpop.f32.mrf.mxu3 }
 0x35f   :  { %v245_v27 = vadd.f32 %v244_v26, %v200_v25 }
 0x361   :  { %284 = vmatmul.f32.gmra.mxu3 %v245_v27 }
 0x3dc   :  { %v282_v37 = vpop.f32.mrf.mxu3 }
 0x3e4   :  { %v285_v42 = vpop.f32.mrf.mxu3 }
 0x3e5   :  { %302 = vmatpush.msrb.mxu3 %v285_v42 }
 0x3e7   :  { %303 = vmatpush.msrb.mxu3 %v282_v37 }
 0x3e8   :  { %467 = vmatmul.msk.f32.vlgmr.msrb.gmra.mxu3 %vm89_vm0, %v588_v32 }
 0x3f0   :  { %468 = vmatmul.msk.f32.gmra.mxu3 %vm89_vm0, %v592_v35 }
 0x46b   :  { %v305_v49 = vpop.f32.mrf.mxu3 }
 0x46c   :  { %v306_v50 = vadd.f32 %v305_v49, %v263_v48 }
 0x46e   :  { %345 = vmatmul.f32.vlgmr.msrb.gmra.mxu2 %v306_v50 }
 0x473   :  { %v308_v52 = vpop.f32.mrf.mxu3 }
 0x474   :  { %v309_v53 = vadd.f32 %v308_v52, %v264_v51 }
 0x476   :  { %348 = vmatmul.f32.gmra.mxu2 %v309_v53 }
 0x4f1   :  { %v346_v61 = vpop.f32.mrf.mxu2 }
 0x4f9   :  { %v349_v2 = vpop.f32.mrf.mxu2 }
 0x4fa   :  { %366 = vmatpush.msra.mxu1 %v349_v2 }
 0x4fc   :  { %367 = vmatpush.msra.mxu1 %v346_v61 }
 0x4fd   :  { %469 = vmatmul.msk.f32.vlgmr.msra.gmra.mxu1 %vm89_vm0, %v588_v32 }
 0x505   :  { %470 = vmatmul.msk.f32.gmra.mxu1 %vm89_vm0, %v592_v35 }
 0x57a   :  { %v369_v9 = vpop.f32.mrf.mxu1 }
 0x57b   :  { %v370_v10 = vadd.f32 %v369_v9, %v327_v8 }
 0x57d   :  { %409 = vmatmul.f32.vlgmr.msrb.gmra.mxu0 %v370_v10 }
 0x582   :  { %v372_v12 = vpop.f32.mrf.mxu1 }
 0x583   :  { %v373_v13 = vadd.f32 %v372_v12, %v328_v11 }
 0x585   :  { %412 = vmatmul.f32.gmra.mxu0 %v373_v13 }
 0x5fa   :  { %v410_v14 = vpop.f32.mrf.mxu0 }
 0x602   :  { %v413_v15 = vpop.f32.mrf.mxu0 }
 0x603   :  { %430 = vmatpush.msrb.mxu1 %v413_v15 }
 0x605   :  { %431 = vmatpush.msrb.mxu1 %v410_v14 }
 0x606   :  { %471 = vmatmul.msk.f32.vlgmr.msrb.gmra.mxu1 %vm89_vm0, %v588_v32 }
 0x60e   :  { %472 = vmatmul.msk.f32.gmra.mxu1 %vm89_vm0, %v592_v35 }
 0x683   :  { %v433_v17 = vpop.f32.mrf.mxu1 }
 0x684   :  { %v434_v18 = vadd.f32 %v433_v17, %v391_v16 }
 0x686   :  { %439 = vst [vmem:[#allocation7] sm:$0xff] %v434_v18 }
 0x68b   :  { %v436_v20 = vpop.f32.mrf.mxu1 }
 0x68c   :  { %v437_v21 = vadd.f32 %v436_v20, %v392_v19 }
 0x68e   :  { %440 = vst [vmem:[#allocation7 + $0x8] sm:$0xff] %v437_v21 }
 0x68f   :  { %453 = dma.vmem_to_hbm [thread:$0]  %s446_s1, 256, %s448_s23, [#allocation4], %s557_s17, %s557_s17, %s558_s18  }
 0x690   :  { %554 = dma.done.wait [#allocation4], 256  }
 0x691   :  { %555 = vsyncadd [#allocation4], 4294967040 }
 0x692   :  { %458 = vsyncpa [#allocation3], 1 }
 0x693   :  { %459 = vsyncpa [#allocation6], 1 }
 0x694   :  { %460 = vsyncpa [#allocation4], 1 }

</bundles_post_ra>
